<compile_context>
chip_gen: v5e
topology: v5e:2x2
jax: 0.10.0
libtpu: 0.0.40
codegen_flags: <defaults>
</compile_context>

<pallas_src>
import jax
import jax.numpy as jnp
import numpy as np
from jax import lax
from jax.experimental import pallas as pl
from jax.experimental.pallas import tpu as pltpu


# Static-unroll threshold for the per-plane H-pass loop; larger tb uses a
# lax.fori_loop so compile time stays bounded for big blocks.
_UNROLL_MAX = 8


# ----------------------------------------------------------------------------
# Host-side helpers
# ----------------------------------------------------------------------------
def _bilinear_matrix(in_size: int, out_size: int, align_corners: bool = False):
    """1-D bilinear interpolation matrix M (out = M @ in), PyTorch semantics."""
    o = np.arange(out_size, dtype=np.float64)
    if align_corners:
        if out_size == 1:
            src = np.zeros_like(o)
        else:
            src = o * ((in_size - 1) / (out_size - 1))
    else:
        src = (o + 0.5) * (in_size / out_size) - 0.5
        src = np.maximum(src, 0.0)           # PyTorch clamps negative src to 0
    i0 = np.clip(np.floor(src).astype(np.int64), 0, in_size - 1)
    i1 = np.minimum(i0 + 1, in_size - 1)
    w1 = src - i0
    w0 = 1.0 - w1
    rows = np.arange(out_size)
    m = np.zeros((out_size, in_size), dtype=np.float64)
    m[rows, i0] += w0
    m[rows, i1] += w1
    return m.astype(np.float32)


def _vmem_budget():
    """(output-block byte cap, vmem_limit_bytes), generation-aware."""
    try:
        vmem = int(pltpu.get_tpu_info().vmem_capacity_bytes)
    except Exception:
        vmem = 64 << 20                      # conservative: v7x per-core VMEM
    if vmem >= (100 << 20):                  # v5e / v6e: 128 MiB physical VMEM
        return 16 << 20, 64 << 20
    # v7x: 64 MiB physical -> total resident (~2.3x out block) must stay small.
    return 7 << 20, 32 << 20


def _choose_tb(B, H, Ho, Wo, itemsize, out_block_cap_bytes):
    """Largest number of planes per grid step whose output block fits the cap."""
    plane_out_bytes = Ho * Wo * itemsize
    cap_planes = max(1, out_block_cap_bytes // max(1, plane_out_bytes))
    sublane = {1: 32, 2: 16}.get(itemsize, 8)

    def legal(t):
        if t < 1 or B % t:
            return False
        # Output block is (t*Ho, Wo): second-minor dim must be sublane aligned
        # unless it spans the whole (B*Ho, Wo) array.
        return (t * Ho) % sublane == 0 or t == B

    tb = 1
    for t in range(1, B + 1):                # largest legal tb under the cap
        if t <= cap_planes and legal(t):
            tb = t

    if not legal(tb):
        # TODO(synk): pathological alignment (odd H with B>1); fall back to the
        # whole batch as one block (always layout-legal, may over-use VMEM).
        return B

    # Prefer >=2 grid steps (v7x megacore, 2 TensorCores) when the whole batch
    # fits in one block, as long as the matmul M dim stays >= 128.
    if tb == B and B >= 2:
        alts = [t for t in range(1, B) if legal(t) and t * H >= 128]
        if alts:
            tb = max(alts)
    return tb


# ----------------------------------------------------------------------------
# Pallas kernel
# ----------------------------------------------------------------------------
def _interp_kernel(wh_ref, ww_t_ref, x_ref, o_ref, y_ref):
    """One grid step: tb planes.

    wh_ref:   (Ho, H)       H-pass matrix (resident across the grid)
    ww_t_ref: (W, Wo)       W-pass matrix, pre-transposed (resident)
    x_ref:    (tb, H, W)    tb input planes
    o_ref:    (tb*Ho, Wo)   tb output planes (rows flattened)
    y_ref:    (tb*Ho, W)    VMEM scratch holding the H-pass intermediate
    """
    tb = x_ref.shape[0]
    ho = wh_ref.shape[0]

    wh = wh_ref[...]                          # hoisted: loaded once per step

    def h_pass(t):
        # (Ho, H) @ (H, W): cheap pass (~20% of FLOPs at scale=4).
        yt = jnp.dot(wh, x_ref[t], preferred_element_type=jnp.float32)
        row = t * ho
        if not isinstance(row, int):
            row = pl.multiple_of(row, ho)     # sublane-aligned dynamic offset
        y_ref[pl.ds(row, ho), :] = yt.astype(y_ref.dtype)

    if tb <= _UNROLL_MAX:
        for t in range(tb):                   # static unroll for small blocks
            h_pass(t)
    else:
        def _body(t, carry):
            h_pass(t)
            return carry
        lax.fori_loop(0, tb, _body, 0)

    # Dominant pass (~80% of FLOPs): ONE batched matmul, M = tb*Ho, N = Wo,
    # followed by a single wide (tb*Ho, Wo) store.
    o_ref[...] = jnp.dot(
        y_ref[...], ww_t_ref[...], preferred_element_type=jnp.float32
    ).astype(o_ref.dtype)


# ----------------------------------------------------------------------------
# Wrapper
# ----------------------------------------------------------------------------
def interpolate_bilinear(x, scale_factor=4, align_corners=False):
    """x: (N, C, H, W) -> (N, C, H*s, W*s); PyTorch bilinear semantics."""
    N, C, H, W = x.shape
    Ho, Wo = H * scale_factor, W * scale_factor
    B = N * C

    # bf16 fast path: bf16 weights + bf16 intermediate (halves HBM + VMEM).
    w_dtype = jnp.bfloat16 if x.dtype == jnp.bfloat16 else jnp.float32
    wh = jnp.asarray(_bilinear_matrix(H, Ho, align_corners), dtype=w_dtype)
    ww_t = jnp.asarray(_bilinear_matrix(W, Wo, align_corners).T, dtype=w_dtype)

    itemsize = jnp.dtype(x.dtype).itemsize
    out_cap, vmem_limit = _vmem_budget()
    tb = _choose_tb(B, H, Ho, Wo, itemsize, out_cap)
    grid = (B // tb,)

    x3 = x.reshape(B, H, W)                   # metadata-only reshape

    flops = 2 * B * (Ho * H * W + Ho * W * Wo)
    bytes_accessed = (B * H * W + B * Ho * Wo) * itemsize \
        + (Ho * H + W * Wo) * jnp.dtype(w_dtype).itemsize

    out2 = pl.pallas_call(
        _interp_kernel,
        out_shape=jax.ShapeDtypeStruct((B * Ho, Wo), x.dtype),
        grid_spec=pltpu.PrefetchScalarGridSpec(
            num_scalar_prefetch=0,
            grid=grid,
            in_specs=[
                pl.BlockSpec((Ho, H), lambda b: (0, 0)),       # Wh (resident)
                pl.BlockSpec((W, Wo), lambda b: (0, 0)),       # Ww^T (resident)
                pl.BlockSpec((tb, H, W), lambda b: (b, 0, 0)),  # tb planes
            ],
            out_specs=pl.BlockSpec((tb * Ho, Wo), lambda b: (b, 0)),
            scratch_shapes=[pltpu.VMEM((tb * Ho, W), w_dtype)],
        ),
        compiler_params=pltpu.CompilerParams(
            dimension_semantics=("parallel",),
            vmem_limit_bytes=vmem_limit,
        ),
        cost_estimate=pl.CostEstimate(
            flops=flops, transcendentals=0, bytes_accessed=bytes_accessed),
    )(wh, ww_t, x3)

    return out2.reshape(N, C, Ho, Wo)


# ----------------------------------------------------------------------------
# Independent reference (NumPy gather formulation of PyTorch F.interpolate)
# ----------------------------------------------------------------------------
def _torch_bilinear_reference_np(x, scale_factor, align_corners=False):
    x = np.asarray(x, dtype=np.float64)
    N, C, H, W = x.shape
    Ho, Wo = H * scale_factor, W * scale_factor

    def src(out_size, in_size):
        o = np.arange(out_size, dtype=np.float64)
        if align_corners:
            s = np.zeros_like(o) if out_size == 1 else o * ((in_size - 1) / (out_size - 1))
        else:
            s = (o + 0.5) * (in_size / out_size) - 0.5
            s = np.maximum(s, 0.0)
        i0 = np.clip(np.floor(s).astype(np.int64), 0, in_size - 1)
        i1 = np.minimum(i0 + 1, in_size - 1)
        w1 = s - i0
        return i0, i1, 1.0 - w1, w1

    h0, h1, a0, a1 = src(Ho, H)
    v0, v1, b0, b1 = src(Wo, W)
    top = (x[:, :, h0, :] * a0[None, None, :, None]
           + x[:, :, h1, :] * a1[None, None, :, None])          # (N, C, Ho, W)
    out = (top[:, :, :, v0] * b0[None, None, None, :]
           + top[:, :, :, v1] * b1[None, None, None, :])        # (N, C, Ho, Wo)
    return out


if __name__ == "__main__":
    key = jax.random.PRNGKey(0)
    scale = 4
    k1, k2, k3 = jax.random.split(key, 3)

    # Check 1: small-integer input at the module's nominal shape. For scale=4
    # the interpolation weights are exact multiples of 1/8, so every
    # intermediate is exactly representable regardless of the MXU input
    # rounding mode -> tight comparison against a float64 NumPy reference.
    N, C, H, W = 2, 4, 16, 16
    x_int = jax.random.randint(k1, (N, C, H, W), -8, 8).astype(jnp.float32)
    out_int = jax.block_until_ready(interpolate_bilinear(x_int, scale))
    assert out_int.shape == (N, C, H * scale, W * scale), out_int.shape
    ref_int = _torch_bilinear_reference_np(np.asarray(x_int), scale)
    np.testing.assert_allclose(np.asarray(out_int), ref_int, atol=1e-6, rtol=1e-6)

    # Check 2: Gaussian input, lane-dense output (Wo=128), grid of 2 steps
    # (exercises resident weights across steps + static H-pass path).
    x2 = jax.random.normal(k2, (2, 4, 32, 32), dtype=jnp.float32)
    out2 = jax.block_until_ready(interpolate_bilinear(x2, scale))
    ref2 = _torch_bilinear_reference_np(np.asarray(x2), scale)
    np.testing.assert_allclose(np.asarray(out2), ref2, atol=5e-3, rtol=5e-3)

    # Check 3: larger batch with tiny planes -> tb > _UNROLL_MAX, exercising
    # the fori_loop H-pass path and dynamic sublane-offset scratch stores.
    x3 = jax.random.normal(k3, (2, 16, 8, 8), dtype=jnp.float32)
    out3 = jax.block_until_ready(interpolate_bilinear(x3, scale))
    ref3 = _torch_bilinear_reference_np(np.asarray(x3), scale)
    np.testing.assert_allclose(np.asarray(out3), ref3, atol=5e-3, rtol=5e-3)

    print("KERNEL_OK")
</pallas_src>

<mosaic_0001>
module attributes {stable_mosaic.version = 11 : i64} {
  func.func @_interp_kernel(%arg0: i32, %arg1: memref<64x16xf32, #tpu.memory_space<vmem>>, %arg2: memref<16x64xf32, #tpu.memory_space<vmem>>, %arg3: memref<8x16x16xf32, #tpu.memory_space<vmem>>, %arg4: memref<512x64xf32, #tpu.memory_space<vmem>>, %arg5: memref<512x16xf32, #tpu.memory_space<vmem>>) attributes {dimension_semantics = [#tpu.dimension_semantics<parallel>], iteration_bounds = array<i64: 1>, scalar_prefetch = 0 : i64, scratch_operands = 1 : i64, tpu.core_type = #tpu.core_type<tc>, window_params = [{pipeline_mode = #tpu.pipeline_mode<synchronous>, transform_indices = @transform_0, window_bounds = array<i64: 64, 16>}, {pipeline_mode = #tpu.pipeline_mode<synchronous>, transform_indices = @transform_1, window_bounds = array<i64: 16, 64>}, {transform_indices = @transform_2, window_bounds = array<i64: 8, 16, 16>}, {transform_indices = @transform_3, window_bounds = array<i64: 512, 64>}]} {
    %c0 = arith.constant 0 : index
    %c0_0 = arith.constant 0 : index
    %0 = vector.load %arg1[%c0, %c0_0] : memref<64x16xf32, #tpu.memory_space<vmem>>, vector<64x16xf32>
    %c0_1 = arith.constant 0 : index
    %c0_2 = arith.constant 0 : index
    %c0_3 = arith.constant 0 : index
    %1 = vector.load %arg3[%c0_1, %c0_2, %c0_3] : memref<8x16x16xf32, #tpu.memory_space<vmem>>, vector<1x16x16xf32>
    %2 = vector.shape_cast %1 : vector<1x16x16xf32> to vector<16x16xf32>
    %cst = arith.constant dense<0.000000e+00> : vector<64x16xf32>
    %3 = tpu.matmul %0, %2, %cst {dimension_numbers = #tpu.dot_dimension_numbers<[1], [0], [0], [1], [0, 0, 1, 1], [], []>} : vector<64x16xf32>, vector<16x16xf32>, vector<64x16xf32> -> vector<64x16xf32>
    %c0_4 = arith.constant 0 : index
    %c0_5 = arith.constant 0 : index
    %4 = vector.load %arg5[%c0_4, %c0_5] : memref<512x16xf32, #tpu.memory_space<vmem>>, vector<64x16xf32>
    tpu.vector_store %arg5[%c0_4, %c0_5], %3 {strides = array<i32>} : memref<512x16xf32, #tpu.memory_space<vmem>>, vector<64x16xf32>,
    %c1 = arith.constant 1 : index
    %c0_6 = arith.constant 0 : index
    %c0_7 = arith.constant 0 : index
    %5 = vector.load %arg3[%c1, %c0_6, %c0_7] : memref<8x16x16xf32, #tpu.memory_space<vmem>>, vector<1x16x16xf32>
    %6 = vector.shape_cast %5 : vector<1x16x16xf32> to vector<16x16xf32>
    %cst_8 = arith.constant dense<0.000000e+00> : vector<64x16xf32>
    %7 = tpu.matmul %0, %6, %cst_8 {dimension_numbers = #tpu.dot_dimension_numbers<[1], [0], [0], [1], [0, 0, 1, 1], [], []>} : vector<64x16xf32>, vector<16x16xf32>, vector<64x16xf32> -> vector<64x16xf32>
    %c64 = arith.constant 64 : index
    %c0_9 = arith.constant 0 : index
    %8 = vector.load %arg5[%c64, %c0_9] : memref<512x16xf32, #tpu.memory_space<vmem>>, vector<64x16xf32>
    tpu.vector_store %arg5[%c64, %c0_9], %7 {strides = array<i32>} : memref<512x16xf32, #tpu.memory_space<vmem>>, vector<64x16xf32>,
    %c2 = arith.constant 2 : index
    %c0_10 = arith.constant 0 : index
    %c0_11 = arith.constant 0 : index
    %9 = vector.load %arg3[%c2, %c0_10, %c0_11] : memref<8x16x16xf32, #tpu.memory_space<vmem>>, vector<1x16x16xf32>
    %10 = vector.shape_cast %9 : vector<1x16x16xf32> to vector<16x16xf32>
    %cst_12 = arith.constant dense<0.000000e+00> : vector<64x16xf32>
    %11 = tpu.matmul %0, %10, %cst_12 {dimension_numbers = #tpu.dot_dimension_numbers<[1], [0], [0], [1], [0, 0, 1, 1], [], []>} : vector<64x16xf32>, vector<16x16xf32>, vector<64x16xf32> -> vector<64x16xf32>
    %c128 = arith.constant 128 : index
    %c0_13 = arith.constant 0 : index
    %12 = vector.load %arg5[%c128, %c0_13] : memref<512x16xf32, #tpu.memory_space<vmem>>, vector<64x16xf32>
    tpu.vector_store %arg5[%c128, %c0_13], %11 {strides = array<i32>} : memref<512x16xf32, #tpu.memory_space<vmem>>, vector<64x16xf32>,
    %c3 = arith.constant 3 : index
    %c0_14 = arith.constant 0 : index
    %c0_15 = arith.constant 0 : index
    %13 = vector.load %arg3[%c3, %c0_14, %c0_15] : memref<8x16x16xf32, #tpu.memory_space<vmem>>, vector<1x16x16xf32>
    %14 = vector.shape_cast %13 : vector<1x16x16xf32> to vector<16x16xf32>
    %cst_16 = arith.constant dense<0.000000e+00> : vector<64x16xf32>
    %15 = tpu.matmul %0, %14, %cst_16 {dimension_numbers = #tpu.dot_dimension_numbers<[1], [0], [0], [1], [0, 0, 1, 1], [], []>} : vector<64x16xf32>, vector<16x16xf32>, vector<64x16xf32> -> vector<64x16xf32>
    %c192 = arith.constant 192 : index
    %c0_17 = arith.constant 0 : index
    %16 = vector.load %arg5[%c192, %c0_17] : memref<512x16xf32, #tpu.memory_space<vmem>>, vector<64x16xf32>
    tpu.vector_store %arg5[%c192, %c0_17], %15 {strides = array<i32>} : memref<512x16xf32, #tpu.memory_space<vmem>>, vector<64x16xf32>,
    %c4 = arith.constant 4 : index
    %c0_18 = arith.constant 0 : index
    %c0_19 = arith.constant 0 : index
    %17 = vector.load %arg3[%c4, %c0_18, %c0_19] : memref<8x16x16xf32, #tpu.memory_space<vmem>>, vector<1x16x16xf32>
    %18 = vector.shape_cast %17 : vector<1x16x16xf32> to vector<16x16xf32>
    %cst_20 = arith.constant dense<0.000000e+00> : vector<64x16xf32>
    %19 = tpu.matmul %0, %18, %cst_20 {dimension_numbers = #tpu.dot_dimension_numbers<[1], [0], [0], [1], [0, 0, 1, 1], [], []>} : vector<64x16xf32>, vector<16x16xf32>, vector<64x16xf32> -> vector<64x16xf32>
    %c256 = arith.constant 256 : index
    %c0_21 = arith.constant 0 : index
    %20 = vector.load %arg5[%c256, %c0_21] : memref<512x16xf32, #tpu.memory_space<vmem>>, vector<64x16xf32>
    tpu.vector_store %arg5[%c256, %c0_21], %19 {strides = array<i32>} : memref<512x16xf32, #tpu.memory_space<vmem>>, vector<64x16xf32>,
    %c5 = arith.constant 5 : index
    %c0_22 = arith.constant 0 : index
    %c0_23 = arith.constant 0 : index
    %21 = vector.load %arg3[%c5, %c0_22, %c0_23] : memref<8x16x16xf32, #tpu.memory_space<vmem>>, vector<1x16x16xf32>
    %22 = vector.shape_cast %21 : vector<1x16x16xf32> to vector<16x16xf32>
    %cst_24 = arith.constant dense<0.000000e+00> : vector<64x16xf32>
    %23 = tpu.matmul %0, %22, %cst_24 {dimension_numbers = #tpu.dot_dimension_numbers<[1], [0], [0], [1], [0, 0, 1, 1], [], []>} : vector<64x16xf32>, vector<16x16xf32>, vector<64x16xf32> -> vector<64x16xf32>
    %c320 = arith.constant 320 : index
    %c0_25 = arith.constant 0 : index
    %24 = vector.load %arg5[%c320, %c0_25] : memref<512x16xf32, #tpu.memory_space<vmem>>, vector<64x16xf32>
    tpu.vector_store %arg5[%c320, %c0_25], %23 {strides = array<i32>} : memref<512x16xf32, #tpu.memory_space<vmem>>, vector<64x16xf32>,
    %c6 = arith.constant 6 : index
    %c0_26 = arith.constant 0 : index
    %c0_27 = arith.constant 0 : index
    %25 = vector.load %arg3[%c6, %c0_26, %c0_27] : memref<8x16x16xf32, #tpu.memory_space<vmem>>, vector<1x16x16xf32>
    %26 = vector.shape_cast %25 : vector<1x16x16xf32> to vector<16x16xf32>
    %cst_28 = arith.constant dense<0.000000e+00> : vector<64x16xf32>
    %27 = tpu.matmul %0, %26, %cst_28 {dimension_numbers = #tpu.dot_dimension_numbers<[1], [0], [0], [1], [0, 0, 1, 1], [], []>} : vector<64x16xf32>, vector<16x16xf32>, vector<64x16xf32> -> vector<64x16xf32>
    %c384 = arith.constant 384 : index
    %c0_29 = arith.constant 0 : index
    %28 = vector.load %arg5[%c384, %c0_29] : memref<512x16xf32, #tpu.memory_space<vmem>>, vector<64x16xf32>
    tpu.vector_store %arg5[%c384, %c0_29], %27 {strides = array<i32>} : memref<512x16xf32, #tpu.memory_space<vmem>>, vector<64x16xf32>,
    %c7 = arith.constant 7 : index
    %c0_30 = arith.constant 0 : index
    %c0_31 = arith.constant 0 : index
    %29 = vector.load %arg3[%c7, %c0_30, %c0_31] : memref<8x16x16xf32, #tpu.memory_space<vmem>>, vector<1x16x16xf32>
    %30 = vector.shape_cast %29 : vector<1x16x16xf32> to vector<16x16xf32>
    %cst_32 = arith.constant dense<0.000000e+00> : vector<64x16xf32>
    %31 = tpu.matmul %0, %30, %cst_32 {dimension_numbers = #tpu.dot_dimension_numbers<[1], [0], [0], [1], [0, 0, 1, 1], [], []>} : vector<64x16xf32>, vector<16x16xf32>, vector<64x16xf32> -> vector<64x16xf32>
    %c448 = arith.constant 448 : index
    %c0_33 = arith.constant 0 : index
    %32 = vector.load %arg5[%c448, %c0_33] : memref<512x16xf32, #tpu.memory_space<vmem>>, vector<64x16xf32>
    tpu.vector_store %arg5[%c448, %c0_33], %31 {strides = array<i32>} : memref<512x16xf32, #tpu.memory_space<vmem>>, vector<64x16xf32>,
    %c0_34 = arith.constant 0 : index
    %c0_35 = arith.constant 0 : index
    %33 = vector.load %arg5[%c0_34, %c0_35] : memref<512x16xf32, #tpu.memory_space<vmem>>, vector<512x16xf32>
    %c0_36 = arith.constant 0 : index
    %c0_37 = arith.constant 0 : index
    %34 = vector.load %arg2[%c0_36, %c0_37] : memref<16x64xf32, #tpu.memory_space<vmem>>, vector<16x64xf32>
    %cst_38 = arith.constant dense<0.000000e+00> : vector<512x64xf32>
    %35 = tpu.matmul %33, %34, %cst_38 {dimension_numbers = #tpu.dot_dimension_numbers<[1], [0], [0], [1], [0, 0, 1, 1], [], []>} : vector<512x16xf32>, vector<16x64xf32>, vector<512x64xf32> -> vector<512x64xf32>
    %c0_39 = arith.constant 0 : index
    %c0_40 = arith.constant 0 : index
    %36 = vector.load %arg4[%c0_39, %c0_40] : memref<512x64xf32, #tpu.memory_space<vmem>>, vector<512x64xf32>
    tpu.vector_store %arg4[%c0_39, %c0_40], %35 {strides = array<i32>} : memref<512x64xf32, #tpu.memory_space<vmem>>, vector<512x64xf32>,
    return
  }
  func.func @transform_0(%arg0: i32) -> (i32, i32) {
    %c0_i32 = arith.constant 0 : i32
    %c0_i32_0 = arith.constant 0 : i32
    %c0_i32_1 = arith.constant 0 : i32
    return %c0_i32, %c0_i32_0 : i32, i32
  }
  func.func @transform_1(%arg0: i32) -> (i32, i32) {
    %c0_i32 = arith.constant 0 : i32
    %c0_i32_0 = arith.constant 0 : i32
    %c0_i32_1 = arith.constant 0 : i32
    return %c0_i32, %c0_i32_0 : i32, i32
  }
  func.func @transform_2(%arg0: i32) -> (i32, i32, i32) {
    %c0_i32 = arith.constant 0 : i32
    %c0_i32_0 = arith.constant 0 : i32
    %c0_i32_1 = arith.constant 0 : i32
    return %arg0, %c0_i32, %c0_i32_0 : i32, i32, i32
  }
  func.func @transform_3(%arg0: i32) -> (i32, i32) {
    %c0_i32 = arith.constant 0 : i32
    %c0_i32_0 = arith.constant 0 : i32
    return %arg0, %c0_i32 : i32, i32
  }
}

</mosaic_0001>

<bundles_post_ra>
// kernel: tpu_custom_call.1
= control target key start
LH: loop header
LB: loop body
LE: loop exit
PB: predicated region body
PF: predicated region fallthrough
CT: control target
= control target key end

     0   :  { %8 = vsyncpa [#allocation4], 0  ;;  %s1178_s15 = smov [#allocation3]   ;;  %s1179_s17 = smov 128   ;;  %s1762_s0 = inlined_call_operand.vmem [shape: f32[64,16], index: 0, kind: input, shape index: {}]   ;;  %s1763_s1 = inlined_call_operand.vmem [shape: f32[16,64], index: 1, kind: input, shape index: {}]   ;;  %s1764_s2 = inlined_call_operand.hbm [shape: f32[8,16,16], index: 2, kind: input, shape index: {}]   ;;  %s1765_s3 = inlined_call_operand.vmem [shape: f32[512,64], index: 3, kind: output, shape index: {}]  }
   0x1   :  { %s17_s14 = sshll.u32 %s1764_s2, 4  ;;  %s19_s16 = sshll.u32 %s1178_s15, 4  ;;  %s18_s14 = int_to_ptr.hbm [resolvable:$true] %s17_s14  ;;  %s20_s16 = int_to_ptr.vmem [resolvable:$true] %s19_s16 }
   0x2   :  { %s1180_s18 = smov 8  }
   0x3   :  { %25 = dma.hbm_to_vmem [thread:$0]  %s18_s14, 2048, %s20_s16, [#allocation4], %s1179_s17, %s1179_s17, %s1180_s18  }
   0x4   :  { %1176 = dma.done.wait [#allocation4], 2048  }
   0x5   :  { %1177 = vsyncadd [#allocation4], 4294965248  ;;  %v168_v0 = vld [vmem:[#allocation3 + $0x28] sm:$0xff]  ;;  %v167_v1 = vld [vmem:[#allocation3 + $0x20] sm:$0xff]  ;;  %vm40_vm0 = vcmask 130048   ;;  %vm945_vm1 = vcmask 523264  }
   0x6   :  { %183 = vmatpush.msra.mxu2 %v168_v0  ;;  %v1207_v2 = vld [vmem:[%s1762_s0] sm:$0xff]  ;;  %v39_v3 = vld [vmem:[#allocation3 + $0x8] sm:$0xff]  ;;  %v116_v6 = vld [vmem:[#allocation3 + $0x18] sm:$0xff] }
   0x7   :  { %v38_v4 = vld [vmem:[#allocation3] sm:$0xff]  ;;  %v376_v5 = vld [vmem:[#allocation3 + $0x68] sm:$0xff]  ;;  %79 = vmatpush.msra.mxu0 %v39_v3  ;;  %131 = vmatpush.msra.mxu1 %v116_v6  ;;  %v115_v8 = vld [vmem:[#allocation3 + $0x10] sm:$0xff] }
   0x8   :  { %184 = vmatpush.msra.mxu2 %v167_v1  ;;  %v272_v7 = vld [vmem:[#allocation3 + $0x48] sm:$0xff]  ;;  %v375_v9 = vld [vmem:[#allocation3 + $0x60] sm:$0xff]  ;;  %v1229_v12 = vld [vmem:[%s1762_s0 + $0x10] sm:$0xff] }
   0x9   :  { %1031 = vmatmul.msk.f32.vlgmr.msra.gmra.mxu2 %vm40_vm0, %v1207_v2  ;;  %80 = vmatpush.msra.mxu0 %v38_v4  ;;  %v271_v10 = vld [vmem:[#allocation3 + $0x40] sm:$0xff]  ;;  %v1218_v11 = vld [vmem:[%s1762_s0 + $0x8] sm:$0xff]  ;;  %v1240_v13 = vld [vmem:[%s1762_s0 + $0x18] sm:$0xff] }
   0xa   :  { %391 = vmatpush.msrb.mxu2 %v376_v5  ;;  %1015 = vmatmul.msk.f32.vlgmr.msra.gmra.mxu0 %vm40_vm0, %v1207_v2  ;;  %v220_v14 = vld [vmem:[#allocation3 + $0x38] sm:$0xff]  ;;  %v219_v15 = vld [vmem:[#allocation3 + $0x30] sm:$0xff]  ;;  %v1253_v16 = vld [vmem:[%s1762_s0 + $0x20] sm:$0xff] }
   0xb   :  { %287 = vmatpush.msrb.mxu0 %v272_v7  ;;  %132 = vmatpush.msra.mxu1 %v115_v8  ;;  %v428_v17 = vld [vmem:[#allocation3 + $0x78] sm:$0xff]  ;;  %v1266_v19 = vld [vmem:[%s1762_s0 + $0x28] sm:$0xff]  ;;  %v323_v20 = vld [vmem:[#allocation3 + $0x50] sm:$0xff] }
   0xc   :  { %1023 = vmatmul.msk.f32.vlgmr.msra.gmra.mxu1 %vm40_vm0, %v1207_v2  ;;  %392 = vmatpush.msrb.mxu2 %v375_v9  ;;  %v324_v18 = vld [vmem:[#allocation3 + $0x58] sm:$0xff]  ;;  %v1279_v21 = vld [vmem:[%s1762_s0 + $0x30] sm:$0xff]  ;;  %v543_v24 = vld [vmem:[%s1763_s1 + $0x8] sm:$0xff] }
   0xd   :  { %288 = vmatpush.msrb.mxu0 %v271_v10  ;;  %235 = vmatpush.msra.mxu3 %v220_v14  ;;  %v1292_v22 = vld [vmem:[%s1762_s0 + $0x38] sm:$0xff]  ;;  %v427_v23 = vld [vmem:[#allocation3 + $0x70] sm:$0xff]  ;;  %v542_v25 = vld [vmem:[%s1763_s1] sm:$0xff] }
   0xe   :  { %339 = vmatpush.msrb.mxu1 %v324_v18  ;;  %1144 = vmatpush.msra.mxu2 %v543_v24 }
   0xf   :  { %236 = vmatpush.msra.mxu3 %v219_v15  ;;  %750 = vmatpush.msra.mxu0 %v543_v24 }
  0x10   :  { %1039 = vmatmul.msk.f32.vlgmr.msra.gmra.mxu3 %vm40_vm0, %v1207_v2  ;;  %340 = vmatpush.msrb.mxu1 %v323_v20 }
  0x11   :  { %1032 = vmatmul.msk.f32.gmra.mxu2 %vm40_vm0, %v1218_v11  ;;  %443 = vmatpush.msrb.mxu3 %v428_v17 }
  0x12   :  { %1016 = vmatmul.msk.f32.gmra.mxu0 %vm40_vm0, %v1218_v11  ;;  %1143 = vmatpush.msra.mxu1 %v543_v24 }
  0x13   :  { %444 = vmatpush.msrb.mxu3 %v427_v23  ;;  %751 = vmatpush.msra.mxu0 %v542_v25 }
  0x14   :  { %1024 = vmatmul.msk.f32.gmra.mxu1 %vm40_vm0, %v1218_v11  ;;  %1147 = vmatpush.msra.mxu2 %v542_v25 }
  0x15   :  { %1145 = vmatpush.msra.mxu3 %v543_v24  ;;  %1146 = vmatpush.msra.mxu1 %v542_v25 }
  0x17   :  { %1148 = vmatpush.msra.mxu3 %v542_v25 }
  0x18   :  { %1040 = vmatmul.msk.f32.gmra.mxu3 %vm40_vm0, %v1218_v11 }
  0x19   :  { %1033 = vmatmul.msk.f32.gmra.mxu2 %vm40_vm0, %v1229_v12 }
  0x1a   :  { %1017 = vmatmul.msk.f32.gmra.mxu0 %vm40_vm0, %v1229_v12 }
  0x1c   :  { %1025 = vmatmul.msk.f32.gmra.mxu1 %vm40_vm0, %v1229_v12 }
  0x20   :  { %1041 = vmatmul.msk.f32.gmra.mxu3 %vm40_vm0, %v1229_v12 }
  0x21   :  { %1034 = vmatmul.msk.f32.gmra.mxu2 %vm40_vm0, %v1240_v13 }
  0x22   :  { %1018 = vmatmul.msk.f32.gmra.mxu0 %vm40_vm0, %v1240_v13 }
  0x24   :  { %1026 = vmatmul.msk.f32.gmra.mxu1 %vm40_vm0, %v1240_v13 }
  0x28   :  { %1042 = vmatmul.msk.f32.gmra.mxu3 %vm40_vm0, %v1240_v13 }
  0x29   :  { %1035 = vmatmul.msk.f32.gmra.mxu2 %vm40_vm0, %v1253_v16 }
  0x2a   :  { %1019 = vmatmul.msk.f32.gmra.mxu0 %vm40_vm0, %v1253_v16 }
  0x2c   :  { %1027 = vmatmul.msk.f32.gmra.mxu1 %vm40_vm0, %v1253_v16 }
  0x30   :  { %1043 = vmatmul.msk.f32.gmra.mxu3 %vm40_vm0, %v1253_v16 }
  0x31   :  { %1036 = vmatmul.msk.f32.gmra.mxu2 %vm40_vm0, %v1266_v19 }
  0x32   :  { %1020 = vmatmul.msk.f32.gmra.mxu0 %vm40_vm0, %v1266_v19 }
  0x34   :  { %1028 = vmatmul.msk.f32.gmra.mxu1 %vm40_vm0, %v1266_v19 }
  0x38   :  { %1044 = vmatmul.msk.f32.gmra.mxu3 %vm40_vm0, %v1266_v19 }
  0x39   :  { %1037 = vmatmul.msk.f32.gmra.mxu2 %vm40_vm0, %v1279_v21 }
  0x3a   :  { %1021 = vmatmul.msk.f32.gmra.mxu0 %vm40_vm0, %v1279_v21 }
  0x3c   :  { %1029 = vmatmul.msk.f32.gmra.mxu1 %vm40_vm0, %v1279_v21 }
  0x40   :  { %1045 = vmatmul.msk.f32.gmra.mxu3 %vm40_vm0, %v1279_v21 }
  0x41   :  { %1038 = vmatmul.msk.f32.gmra.mxu2 %vm40_vm0, %v1292_v22 }
  0x42   :  { %1022 = vmatmul.msk.f32.gmra.mxu0 %vm40_vm0, %v1292_v22 }
  0x44   :  { %1030 = vmatmul.msk.f32.gmra.mxu1 %vm40_vm0, %v1292_v22 }
  0x48   :  { %1046 = vmatmul.msk.f32.gmra.mxu3 %vm40_vm0, %v1292_v22 }
  0x49   :  { %1063 = vmatmul.msk.f32.vlgmr.msrb.gmra.mxu2 %vm40_vm0, %v1207_v2 }
  0x4a   :  { %1047 = vmatmul.msk.f32.vlgmr.msrb.gmra.mxu0 %vm40_vm0, %v1207_v2 }
  0x4c   :  { %1055 = vmatmul.msk.f32.vlgmr.msrb.gmra.mxu1 %vm40_vm0, %v1207_v2 }
  0x50   :  { %1071 = vmatmul.msk.f32.vlgmr.msrb.gmra.mxu3 %vm40_vm0, %v1207_v2 }
  0x51   :  { %1064 = vmatmul.msk.f32.gmra.mxu2 %vm40_vm0, %v1218_v11 }
  0x52   :  { %1048 = vmatmul.msk.f32.gmra.mxu0 %vm40_vm0, %v1218_v11 }
  0x54   :  { %1056 = vmatmul.msk.f32.gmra.mxu1 %vm40_vm0, %v1218_v11 }
  0x58   :  { %1072 = vmatmul.msk.f32.gmra.mxu3 %vm40_vm0, %v1218_v11 }
  0x59   :  { %1065 = vmatmul.msk.f32.gmra.mxu2 %vm40_vm0, %v1229_v12 }
  0x5a   :  { %1049 = vmatmul.msk.f32.gmra.mxu0 %vm40_vm0, %v1229_v12 }
  0x5c   :  { %1057 = vmatmul.msk.f32.gmra.mxu1 %vm40_vm0, %v1229_v12 }
  0x60   :  { %1073 = vmatmul.msk.f32.gmra.mxu3 %vm40_vm0, %v1229_v12 }
  0x61   :  { %1066 = vmatmul.msk.f32.gmra.mxu2 %vm40_vm0, %v1240_v13 }
  0x62   :  { %1050 = vmatmul.msk.f32.gmra.mxu0 %vm40_vm0, %v1240_v13 }
  0x64   :  { %1058 = vmatmul.msk.f32.gmra.mxu1 %vm40_vm0, %v1240_v13 }
  0x68   :  { %1074 = vmatmul.msk.f32.gmra.mxu3 %vm40_vm0, %v1240_v13 }
  0x69   :  { %1067 = vmatmul.msk.f32.gmra.mxu2 %vm40_vm0, %v1253_v16 }
  0x6a   :  { %1051 = vmatmul.msk.f32.gmra.mxu0 %vm40_vm0, %v1253_v16 }
  0x6c   :  { %1059 = vmatmul.msk.f32.gmra.mxu1 %vm40_vm0, %v1253_v16 }
  0x70   :  { %1075 = vmatmul.msk.f32.gmra.mxu3 %vm40_vm0, %v1253_v16 }
  0x71   :  { %1068 = vmatmul.msk.f32.gmra.mxu2 %vm40_vm0, %v1266_v19 }
  0x72   :  { %1052 = vmatmul.msk.f32.gmra.mxu0 %vm40_vm0, %v1266_v19 }
  0x74   :  { %1060 = vmatmul.msk.f32.gmra.mxu1 %vm40_vm0, %v1266_v19 }
  0x78   :  { %1076 = vmatmul.msk.f32.gmra.mxu3 %vm40_vm0, %v1266_v19 }
  0x79   :  { %1069 = vmatmul.msk.f32.gmra.mxu2 %vm40_vm0, %v1279_v21 }
  0x7a   :  { %1053 = vmatmul.msk.f32.gmra.mxu0 %vm40_vm0, %v1279_v21 }
  0x7c   :  { %1061 = vmatmul.msk.f32.gmra.mxu1 %vm40_vm0, %v1279_v21 }
  0x80   :  { %1077 = vmatmul.msk.f32.gmra.mxu3 %vm40_vm0, %v1279_v21 }
  0x81   :  { %1070 = vmatmul.msk.f32.gmra.mxu2 %vm40_vm0, %v1292_v22 }
  0x82   :  { %1054 = vmatmul.msk.f32.gmra.mxu0 %vm40_vm0, %v1292_v22 }
  0x84   :  { %1062 = vmatmul.msk.f32.gmra.mxu1 %vm40_vm0, %v1292_v22 }
  0x87   :  { %v82_v26 = vpop.f32.mrf.mxu0 }
  0x88   :  { %106 = vst.msk [vmem:[#allocation2] sm:$0xff] %vm40_vm0, %v82_v26  ;;  %1078 = vmatmul.msk.f32.gmra.mxu3 %vm40_vm0, %v1292_v22 }
  0x89   :  { %v134_v27 = vpop.f32.mrf.mxu1 }
  0x8a   :  { %158 = vst.msk [vmem:[#allocation2 + $0x40] sm:$0xff] %vm40_vm0, %v134_v27 }
  0x8c   :  { %v186_v28 = vpop.f32.mrf.mxu2 }
  0x8d   :  { %210 = vst.msk [vmem:[#allocation2 + $0x80] sm:$0xff] %vm40_vm0, %v186_v28 }
  0x8f   :  { %v85_v29 = vpop.f32.mrf.mxu0  ;;  %v478_v30 = vld [vmem:[#allocation2] sm:$0xff] }
  0x90   :  { %107 = vst.msk [vmem:[#allocation2 + $0x8] sm:$0xff] %vm40_vm0, %v85_v29  ;;  %1079 = vmatmul.msk.f32.vlgmr.msra.gmra.mxu0 %vm40_vm0, %v478_v30 }
  0x91   :  { %v137_v31 = vpop.f32.mrf.mxu1  ;;  %v486_v10 = vld [vmem:[#allocation2 + $0x40] sm:$0xff] }
  0x92   :  { %159 = vst.msk [vmem:[#allocation2 + $0x48] sm:$0xff] %vm40_vm0, %v137_v31 }
  0x93   :  { %v238_v46 = vpop.f32.mrf.mxu3 }
  0x94   :  { %v189_v32 = vpop.f32.mrf.mxu2  ;;  %v494_v33 = vld [vmem:[#allocation2 + $0x80] sm:$0xff]  ;;  %262 = vst.msk [vmem:[#allocation2 + $0xc0] sm:$0xff] %vm40_vm0, %v238_v46 }
  0x95   :  { %211 = vst.msk [vmem:[#allocation2 + $0x88] sm:$0xff] %vm40_vm0, %v189_v32  ;;  %1095 = vmatmul.msk.f32.vlgmr.msra.gmra.mxu1 %vm40_vm0, %v494_v33 }
  0x97   :  { %v88_v34 = vpop.f32.mrf.mxu0  ;;  %v479_v35 = vld [vmem:[#allocation2 + $0x8] sm:$0xff] }
  0x98   :  { %108 = vst.msk [vmem:[#allocation2 + $0x10] sm:$0xff] %vm40_vm0, %v88_v34  ;;  %1080 = vmatmul.msk.f32.gmra.mxu0 %vm40_vm0, %v479_v35 }
  0x99   :  { %v140_v36 = vpop.f32.mrf.mxu1  ;;  %v487_v18 = vld [vmem:[#allocation2 + $0x48] sm:$0xff] }
  0x9a   :  { %160 = vst.msk [vmem:[#allocation2 + $0x50] sm:$0xff] %vm40_vm0, %v140_v36 }
  0x9b   :  { %v241_v52 = vpop.f32.mrf.mxu3  ;;  %v502_v15 = vld [vmem:[#allocation2 + $0xc0] sm:$0xff] }
  0x9c   :  { %v192_v37 = vpop.f32.mrf.mxu2  ;;  %v495_v38 = vld [vmem:[#allocation2 + $0x88] sm:$0xff]  ;;  %263 = vst.msk [vmem:[#allocation2 + $0xc8] sm:$0xff] %vm40_vm0, %v241_v52 }
  0x9d   :  { %212 = vst.msk [vmem:[#allocation2 + $0x90] sm:$0xff] %vm40_vm0, %v192_v37  ;;  %1096 = vmatmul.msk.f32.gmra.mxu1 %vm40_vm0, %v495_v38 }
  0x9f   :  { %v91_v39 = vpop.f32.mrf.mxu0  ;;  %v480_v40 = vld [vmem:[#allocation2 + $0x10] sm:$0xff] }
  0xa0   :  { %109 = vst.msk [vmem:[#allocation2 + $0x18] sm:$0xff] %vm40_vm0, %v91_v39  ;;  %1081 = vmatmul.msk.f32.gmra.mxu0 %vm40_vm0, %v480_v40 }
  0xa1   :  { %v143_v41 = vpop.f32.mrf.mxu1  ;;  %v488_v26 = vld [vmem:[#allocation2 + $0x50] sm:$0xff] }
  0xa2   :  { %161 = vst.msk [vmem:[#allocation2 + $0x58] sm:$0xff] %vm40_vm0, %v143_v41 }
  0xa3   :  { %v244_v58 = vpop.f32.mrf.mxu3  ;;  %v503_v23 = vld [vmem:[#allocation2 + $0xc8] sm:$0xff] }
  0xa4   :  { %v195_v42 = vpop.f32.mrf.mxu2  ;;  %v496_v43 = vld [vmem:[#allocation2 + $0x90] sm:$0xff]  ;;  %264 = vst.msk [vmem:[#allocation2 + $0xd0] sm:$0xff] %vm40_vm0, %v244_v58 }
  0xa5   :  { %213 = vst.msk [vmem:[#allocation2 + $0x98] sm:$0xff] %vm40_vm0, %v195_v42  ;;  %1097 = vmatmul.msk.f32.gmra.mxu1 %vm40_vm0, %v496_v43 }
  0xa7   :  { %v94_v44 = vpop.f32.mrf.mxu0  ;;  %v481_v45 = vld [vmem:[#allocation2 + $0x18] sm:$0xff] }
  0xa8   :  { %110 = vst.msk [vmem:[#allocation2 + $0x20] sm:$0xff] %vm40_vm0, %v94_v44  ;;  %1082 = vmatmul.msk.f32.gmra.mxu0 %vm40_vm0, %v481_v45 }
  0xa9   :  { %v146_v47 = vpop.f32.mrf.mxu1  ;;  %v489_v34 = vld [vmem:[#allocation2 + $0x58] sm:$0xff] }
  0xaa   :  { %162 = vst.msk [vmem:[#allocation2 + $0x60] sm:$0xff] %vm40_vm0, %v146_v47 }
  0xab   :  { %v247_v0 = vpop.f32.mrf.mxu3  ;;  %v504_v31 = vld [vmem:[#allocation2 + $0xd0] sm:$0xff] }
  0xac   :  { %v198_v48 = vpop.f32.mrf.mxu2  ;;  %v497_v49 = vld [vmem:[#allocation2 + $0x98] sm:$0xff]  ;;  %265 = vst.msk [vmem:[#allocation2 + $0xd8] sm:$0xff] %vm40_vm0, %v247_v0 }
  0xad   :  { %214 = vst.msk [vmem:[#allocation2 + $0xa0] sm:$0xff] %vm40_vm0, %v198_v48  ;;  %1098 = vmatmul.msk.f32.gmra.mxu1 %vm40_vm0, %v497_v49 }
  0xaf   :  { %v97_v50 = vpop.f32.mrf.mxu0  ;;  %v482_v51 = vld [vmem:[#allocation2 + $0x20] sm:$0xff] }
  0xb0   :  { %111 = vst.msk [vmem:[#allocation2 + $0x28] sm:$0xff] %vm40_vm0, %v97_v50  ;;  %1083 = vmatmul.msk.f32.gmra.mxu0 %vm40_vm0, %v482_v51 }
  0xb1   :  { %v149_v53 = vpop.f32.mrf.mxu1  ;;  %v490_v42 = vld [vmem:[#allocation2 + $0x60] sm:$0xff] }
  0xb2   :  { %163 = vst.msk [vmem:[#allocation2 + $0x68] sm:$0xff] %vm40_vm0, %v149_v53 }
  0xb3   :  { %v250_v6 = vpop.f32.mrf.mxu3  ;;  %v505_v39 = vld [vmem:[#allocation2 + $0xd8] sm:$0xff] }
  0xb4   :  { %v201_v54 = vpop.f32.mrf.mxu2  ;;  %v498_v55 = vld [vmem:[#allocation2 + $0xa0] sm:$0xff]  ;;  %266 = vst.msk [vmem:[#allocation2 + $0xe0] sm:$0xff] %vm40_vm0, %v250_v6 }
  0xb5   :  { %215 = vst.msk [vmem:[#allocation2 + $0xa8] sm:$0xff] %vm40_vm0, %v201_v54  ;;  %1099 = vmatmul.msk.f32.gmra.mxu1 %vm40_vm0, %v498_v55 }
  0xb7   :  { %v100_v56 = vpop.f32.mrf.mxu0  ;;  %v483_v57 = vld [vmem:[#allocation2 + $0x28] sm:$0xff] }
  0xb8   :  { %112 = vst.msk [vmem:[#allocation2 + $0x30] sm:$0xff] %vm40_vm0, %v100_v56  ;;  %1084 = vmatmul.msk.f32.gmra.mxu0 %vm40_vm0, %v483_v57 }
  0xb9   :  { %v152_v59 = vpop.f32.mrf.mxu1  ;;  %v491_v50 = vld [vmem:[#allocation2 + $0x68] sm:$0xff] }
  0xba   :  { %164 = vst.msk [vmem:[#allocation2 + $0x70] sm:$0xff] %vm40_vm0, %v152_v59 }
  0xbb   :  { %v253_v13 = vpop.f32.mrf.mxu3  ;;  %v506_v46 = vld [vmem:[#allocation2 + $0xe0] sm:$0xff] }
  0xbc   :  { %v204_v60 = vpop.f32.mrf.mxu2  ;;  %v499_v61 = vld [vmem:[#allocation2 + $0xa8] sm:$0xff]  ;;  %267 = vst.msk [vmem:[#allocation2 + $0xe8] sm:$0xff] %vm40_vm0, %v253_v13 }
  0xbd   :  { %216 = vst.msk [vmem:[#allocation2 + $0xb0] sm:$0xff] %vm40_vm0, %v204_v60  ;;  %1100 = vmatmul.msk.f32.gmra.mxu1 %vm40_vm0, %v499_v61 }
  0xbf   :  { %v103_v62 = vpop.f32.mrf.mxu0  ;;  %v484_v63 = vld [vmem:[#allocation2 + $0x30] sm:$0xff] }
  0xc0   :  { %113 = vst.msk [vmem:[#allocation2 + $0x38] sm:$0xff] %vm40_vm0, %v103_v62  ;;  %1085 = vmatmul.msk.f32.gmra.mxu0 %vm40_vm0, %v484_v63 }
  0xc1   :  { %v155_v1 = vpop.f32.mrf.mxu1  ;;  %v492_v58 = vld [vmem:[#allocation2 + $0x70] sm:$0xff] }
  0xc2   :  { %165 = vst.msk [vmem:[#allocation2 + $0x78] sm:$0xff] %vm40_vm0, %v155_v1 }
  0xc3   :  { %v256_v21 = vpop.f32.mrf.mxu3  ;;  %v507_v54 = vld [vmem:[#allocation2 + $0xe8] sm:$0xff] }
  0xc4   :  { %v207_v2 = vpop.f32.mrf.mxu2  ;;  %v500_v3 = vld [vmem:[#allocation2 + $0xb0] sm:$0xff]  ;;  %268 = vst.msk [vmem:[#allocation2 + $0xf0] sm:$0xff] %vm40_vm0, %v256_v21 }
  0xc5   :  { %217 = vst.msk [vmem:[#allocation2 + $0xb8] sm:$0xff] %vm40_vm0, %v207_v2  ;;  %1101 = vmatmul.msk.f32.gmra.mxu1 %vm40_vm0, %v500_v3 }
  0xc7   :  { %v290_v4 = vpop.f32.mrf.mxu0  ;;  %v485_v5 = vld [vmem:[#allocation2 + $0x38] sm:$0xff] }
  0xc8   :  { %314 = vst.msk [vmem:[#allocation2 + $0x100] sm:$0xff] %vm40_vm0, %v290_v4  ;;  %1086 = vmatmul.msk.f32.gmra.mxu0 %vm40_vm0, %v485_v5 }
  0xc9   :  { %v342_v7 = vpop.f32.mrf.mxu1  ;;  %v493_v2 = vld [vmem:[#allocation2 + $0x78] sm:$0xff] }
  0xca   :  { %366 = vst.msk [vmem:[#allocation2 + $0x140] sm:$0xff] %vm40_vm0, %v342_v7 }
  0xcb   :  { %v259_v29 = vpop.f32.mrf.mxu3  ;;  %v508_v62 = vld [vmem:[#allocation2 + $0xf0] sm:$0xff] }
  0xcc   :  { %v394_v8 = vpop.f32.mrf.mxu2  ;;  %v501_v9 = vld [vmem:[#allocation2 + $0xb8] sm:$0xff]  ;;  %269 = vst.msk [vmem:[#allocation2 + $0xf8] sm:$0xff] %vm40_vm0, %v259_v29 }
  0xcd   :  { %418 = vst.msk [vmem:[#allocation2 + $0x180] sm:$0xff] %vm40_vm0, %v394_v8  ;;  %1102 = vmatmul.msk.f32.gmra.mxu1 %vm40_vm0, %v501_v9 }
  0xcf   :  { %v293_v11 = vpop.f32.mrf.mxu0  ;;  %v510_v12 = vld [vmem:[#allocation2 + $0x100] sm:$0xff] }
  0xd0   :  { %315 = vst.msk [vmem:[#allocation2 + $0x108] sm:$0xff] %vm40_vm0, %v293_v11  ;;  %1087 = vmatmul.msk.f32.gmra.mxu0 %vm40_vm0, %v486_v10  ;;  %1111 = vmatmul.msk.f32.vlgmr.msra.gmra.mxu2 %vm40_vm0, %v510_v12 }
  0xd1   :  { %v345_v14 = vpop.f32.mrf.mxu1  ;;  %v518_v8 = vld [vmem:[#allocation2 + $0x140] sm:$0xff] }
  0xd2   :  { %367 = vst.msk [vmem:[#allocation2 + $0x148] sm:$0xff] %vm40_vm0, %v345_v14 }
  0xd3   :  { %v446_v37 = vpop.f32.mrf.mxu3  ;;  %v509_v4 = vld [vmem:[#allocation2 + $0xf8] sm:$0xff] }
  0xd4   :  { %v397_v16 = vpop.f32.mrf.mxu2  ;;  %v526_v17 = vld [vmem:[#allocation2 + $0x180] sm:$0xff]  ;;  %470 = vst.msk [vmem:[#allocation2 + $0x1c0] sm:$0xff] %vm40_vm0, %v446_v37 }
  0xd5   :  { %419 = vst.msk [vmem:[#allocation2 + $0x188] sm:$0xff] %vm40_vm0, %v397_v16  ;;  %1103 = vmatmul.msk.f32.gmra.mxu1 %vm40_vm0, %v502_v15  ;;  %1127 = vmatmul.msk.f32.vlgmr.msra.gmra.mxu3 %vm40_vm0, %v526_v17 }
  0xd7   :  { %v296_v19 = vpop.f32.mrf.mxu0  ;;  %v511_v20 = vld [vmem:[#allocation2 + $0x108] sm:$0xff] }
  0xd8   :  { %316 = vst.msk [vmem:[#allocation2 + $0x110] sm:$0xff] %vm40_vm0, %v296_v19  ;;  %1088 = vmatmul.msk.f32.gmra.mxu0 %vm40_vm0, %v487_v18  ;;  %1112 = vmatmul.msk.f32.gmra.mxu2 %vm40_vm0, %v511_v20 }
  0xd9   :  { %v348_v22 = vpop.f32.mrf.mxu1  ;;  %v519_v13 = vld [vmem:[#allocation2 + $0x148] sm:$0xff] }
  0xda   :  { %368 = vst.msk [vmem:[#allocation2 + $0x150] sm:$0xff] %vm40_vm0, %v348_v22 }
  0xdb   :  { %v449_v47 = vpop.f32.mrf.mxu3  ;;  %v534_v10 = vld [vmem:[#allocation2 + $0x1c0] sm:$0xff] }
  0xdc   :  { %v400_v24 = vpop.f32.mrf.mxu2  ;;  %v527_v25 = vld [vmem:[#allocation2 + $0x188] sm:$0xff]  ;;  %471 = vst.msk [vmem:[#allocation2 + $0x1c8] sm:$0xff] %vm40_vm0, %v449_v47 }
  0xdd   :  { %420 = vst.msk [vmem:[#allocation2 + $0x190] sm:$0xff] %vm40_vm0, %v400_v24  ;;  %1104 = vmatmul.msk.f32.gmra.mxu1 %vm40_vm0, %v503_v23  ;;  %1128 = vmatmul.msk.f32.gmra.mxu3 %vm40_vm0, %v527_v25 }
  0xdf   :  { %v299_v27 = vpop.f32.mrf.mxu0  ;;  %v512_v28 = vld [vmem:[#allocation2 + $0x110] sm:$0xff] }
  0xe0   :  { %317 = vst.msk [vmem:[#allocation2 + $0x118] sm:$0xff] %vm40_vm0, %v299_v27  ;;  %1089 = vmatmul.msk.f32.gmra.mxu0 %vm40_vm0, %v488_v26  ;;  %1113 = vmatmul.msk.f32.gmra.mxu2 %vm40_vm0, %v512_v28 }
  0xe1   :  { %v351_v30 = vpop.f32.mrf.mxu1  ;;  %v520_v18 = vld [vmem:[#allocation2 + $0x150] sm:$0xff] }
  0xe2   :  { %369 = vst.msk [vmem:[#allocation2 + $0x158] sm:$0xff] %vm40_vm0, %v351_v30 }
  0xe3   :  { %v452_v55 = vpop.f32.mrf.mxu3  ;;  %v535_v15 = vld [vmem:[#allocation2 + $0x1c8] sm:$0xff] }
  0xe4   :  { %v403_v32 = vpop.f32.mrf.mxu2  ;;  %v528_v33 = vld [vmem:[#allocation2 + $0x190] sm:$0xff]  ;;  %472 = vst.msk [vmem:[#allocation2 + $0x1d0] sm:$0xff] %vm40_vm0, %v452_v55 }
  0xe5   :  { %421 = vst.msk [vmem:[#allocation2 + $0x198] sm:$0xff] %vm40_vm0, %v403_v32  ;;  %1105 = vmatmul.msk.f32.gmra.mxu1 %vm40_vm0, %v504_v31  ;;  %1129 = vmatmul.msk.f32.gmra.mxu3 %vm40_vm0, %v528_v33 }
  0xe7   :  { %v302_v35 = vpop.f32.mrf.mxu0  ;;  %v513_v36 = vld [vmem:[#allocation2 + $0x118] sm:$0xff] }
  0xe8   :  { %318 = vst.msk [vmem:[#allocation2 + $0x120] sm:$0xff] %vm40_vm0, %v302_v35  ;;  %1090 = vmatmul.msk.f32.gmra.mxu0 %vm40_vm0, %v489_v34  ;;  %1114 = vmatmul.msk.f32.gmra.mxu2 %vm40_vm0, %v513_v36 }
  0xe9   :  { %v354_v38 = vpop.f32.mrf.mxu1  ;;  %v521_v23 = vld [vmem:[#allocation2 + $0x158] sm:$0xff] }
  0xea   :  { %370 = vst.msk [vmem:[#allocation2 + $0x160] sm:$0xff] %vm40_vm0, %v354_v38 }
  0xeb   :  { %v455_v63 = vpop.f32.mrf.mxu3  ;;  %v536_v20 = vld [vmem:[#allocation2 + $0x1d0] sm:$0xff] }
  0xec   :  { %v406_v40 = vpop.f32.mrf.mxu2  ;;  %v529_v41 = vld [vmem:[#allocation2 + $0x198] sm:$0xff]  ;;  %473 = vst.msk [vmem:[#allocation2 + $0x1d8] sm:$0xff] %vm40_vm0, %v455_v63 }
  0xed   :  { %422 = vst.msk [vmem:[#allocation2 + $0x1a0] sm:$0xff] %vm40_vm0, %v406_v40  ;;  %1106 = vmatmul.msk.f32.gmra.mxu1 %vm40_vm0, %v505_v39  ;;  %1130 = vmatmul.msk.f32.gmra.mxu3 %vm40_vm0, %v529_v41 }
  0xef   :  { %v305_v43 = vpop.f32.mrf.mxu0  ;;  %v514_v44 = vld [vmem:[#allocation2 + $0x120] sm:$0xff] }
  0xf0   :  { %319 = vst.msk [vmem:[#allocation2 + $0x128] sm:$0xff] %vm40_vm0, %v305_v43  ;;  %1091 = vmatmul.msk.f32.gmra.mxu0 %vm40_vm0, %v490_v42  ;;  %1115 = vmatmul.msk.f32.gmra.mxu2 %vm40_vm0, %v514_v44 }
  0xf1   :  { %v357_v45 = vpop.f32.mrf.mxu1  ;;  %v522_v27 = vld [vmem:[#allocation2 + $0x160] sm:$0xff] }
  0xf2   :  { %371 = vst.msk [vmem:[#allocation2 + $0x168] sm:$0xff] %vm40_vm0, %v357_v45 }
  0xf3   :  { %v458_v5 = vpop.f32.mrf.mxu3  ;;  %v537_v25 = vld [vmem:[#allocation2 + $0x1d8] sm:$0xff] }
  0xf4   :  { %v409_v48 = vpop.f32.mrf.mxu2  ;;  %v530_v49 = vld [vmem:[#allocation2 + $0x1a0] sm:$0xff]  ;;  %474 = vst.msk [vmem:[#allocation2 + $0x1e0] sm:$0xff] %vm40_vm0, %v458_v5 }
  0xf5   :  { %423 = vst.msk [vmem:[#allocation2 + $0x1a8] sm:$0xff] %vm40_vm0, %v409_v48  ;;  %1107 = vmatmul.msk.f32.gmra.mxu1 %vm40_vm0, %v506_v46  ;;  %1131 = vmatmul.msk.f32.gmra.mxu3 %vm40_vm0, %v530_v49 }
  0xf7   :  { %v308_v51 = vpop.f32.mrf.mxu0  ;;  %v515_v52 = vld [vmem:[#allocation2 + $0x128] sm:$0xff] }
  0xf8   :  { %320 = vst.msk [vmem:[#allocation2 + $0x130] sm:$0xff] %vm40_vm0, %v308_v51  ;;  %1092 = vmatmul.msk.f32.gmra.mxu0 %vm40_vm0, %v491_v50  ;;  %1116 = vmatmul.msk.f32.gmra.mxu2 %vm40_vm0, %v515_v52 }
  0xf9   :  { %v360_v53 = vpop.f32.mrf.mxu1  ;;  %v523_v31 = vld [vmem:[#allocation2 + $0x168] sm:$0xff] }
  0xfa   :  { %372 = vst.msk [vmem:[#allocation2 + $0x170] sm:$0xff] %vm40_vm0, %v360_v53 }
  0xfb   :  { %v461_v11 = vpop.f32.mrf.mxu3  ;;  %v538_v29 = vld [vmem:[#allocation2 + $0x1e0] sm:$0xff] }
  0xfc   :  { %v412_v56 = vpop.f32.mrf.mxu2  ;;  %v531_v57 = vld [vmem:[#allocation2 + $0x1a8] sm:$0xff]  ;;  %475 = vst.msk [vmem:[#allocation2 + $0x1e8] sm:$0xff] %vm40_vm0, %v461_v11 }
  0xfd   :  { %424 = vst.msk [vmem:[#allocation2 + $0x1b0] sm:$0xff] %vm40_vm0, %v412_v56  ;;  %1108 = vmatmul.msk.f32.gmra.mxu1 %vm40_vm0, %v507_v54  ;;  %1132 = vmatmul.msk.f32.gmra.mxu3 %vm40_vm0, %v531_v57 }
  0xff   :  { %v311_v59 = vpop.f32.mrf.mxu0  ;;  %v516_v60 = vld [vmem:[#allocation2 + $0x130] sm:$0xff] }
 0x100   :  { %321 = vst.msk [vmem:[#allocation2 + $0x138] sm:$0xff] %vm40_vm0, %v311_v59  ;;  %1093 = vmatmul.msk.f32.gmra.mxu0 %vm40_vm0, %v492_v58  ;;  %1117 = vmatmul.msk.f32.gmra.mxu2 %vm40_vm0, %v516_v60 }
 0x101   :  { %v363_v61 = vpop.f32.mrf.mxu1  ;;  %v524_v35 = vld [vmem:[#allocation2 + $0x170] sm:$0xff] }
 0x102   :  { %373 = vst.msk [vmem:[#allocation2 + $0x178] sm:$0xff] %vm40_vm0, %v363_v61 }
 0x103   :  { %v464_v16 = vpop.f32.mrf.mxu3  ;;  %v539_v33 = vld [vmem:[#allocation2 + $0x1e8] sm:$0xff] }
 0x104   :  { %v415_v0 = vpop.f32.mrf.mxu2  ;;  %v532_v1 = vld [vmem:[#allocation2 + $0x1b0] sm:$0xff]  ;;  %476 = vst.msk [vmem:[#allocation2 + $0x1f0] sm:$0xff] %vm40_vm0, %v464_v16 }
 0x105   :  { %425 = vst.msk [vmem:[#allocation2 + $0x1b8] sm:$0xff] %vm40_vm0, %v415_v0  ;;  %1109 = vmatmul.msk.f32.gmra.mxu1 %vm40_vm0, %v508_v62  ;;  %1133 = vmatmul.msk.f32.gmra.mxu3 %vm40_vm0, %v532_v1 }
 0x107   :  { %v517_v3 = vld [vmem:[#allocation2 + $0x138] sm:$0xff] }
 0x108   :  { %1094 = vmatmul.msk.f32.gmra.mxu0 %vm40_vm0, %v493_v2  ;;  %1118 = vmatmul.msk.f32.gmra.mxu2 %vm40_vm0, %v517_v3 }
 0x109   :  { %v525_v39 = vld [vmem:[#allocation2 + $0x178] sm:$0xff] }
 0x10b   :  { %v467_v21 = vpop.f32.mrf.mxu3  ;;  %v540_v37 = vld [vmem:[#allocation2 + $0x1f0] sm:$0xff] }
 0x10c   :  { %v533_v6 = vld [vmem:[#allocation2 + $0x1b8] sm:$0xff]  ;;  %477 = vst.msk [vmem:[#allocation2 + $0x1f8] sm:$0xff] %vm40_vm0, %v467_v21 }
 0x10d   :  { %1110 = vmatmul.msk.f32.gmra.mxu1 %vm40_vm0, %v509_v4  ;;  %1134 = vmatmul.msk.f32.gmra.mxu3 %vm40_vm0, %v533_v6  ;;  %v753_v7 = vpop.f32.mrf.mxu0 }
 0x10e   :  { %946 = vst.msk [vmem:[%s1765_s3] sm:$0xff] %vm945_vm1, %v753_v7 }
 0x110   :  { %1119 = vmatmul.msk.f32.gmra.mxu2 %vm40_vm0, %v518_v8 }
 0x112   :  { %v801_v9 = vpop.f32.mrf.mxu1 }
 0x113   :  { %962 = vst.msk [vmem:[%s1765_s3 + $0x80] sm:$0xff] %vm945_vm1, %v801_v9  ;;  %v541_v41 = vld [vmem:[#allocation2 + $0x1f8] sm:$0xff] }
 0x115   :  { %1135 = vmatmul.msk.f32.gmra.mxu3 %vm40_vm0, %v534_v10  ;;  %v756_v12 = vpop.f32.mrf.mxu0 }
 0x116   :  { %947 = vst.msk [vmem:[%s1765_s3 + $0x8] sm:$0xff] %vm945_vm1, %v756_v12 }
 0x118   :  { %1120 = vmatmul.msk.f32.gmra.mxu2 %vm40_vm0, %v519_v13 }
 0x11a   :  { %v804_v14 = vpop.f32.mrf.mxu1 }
 0x11b   :  { %963 = vst.msk [vmem:[%s1765_s3 + $0x88] sm:$0xff] %vm945_vm1, %v804_v14 }
 0x11d   :  { %1136 = vmatmul.msk.f32.gmra.mxu3 %vm40_vm0, %v535_v15  ;;  %v759_v17 = vpop.f32.mrf.mxu0 }
 0x11e   :  { %948 = vst.msk [vmem:[%s1765_s3 + $0x10] sm:$0xff] %vm945_vm1, %v759_v17 }
 0x120   :  { %1121 = vmatmul.msk.f32.gmra.mxu2 %vm40_vm0, %v520_v18 }
 0x122   :  { %v807_v19 = vpop.f32.mrf.mxu1 }
 0x123   :  { %964 = vst.msk [vmem:[%s1765_s3 + $0x90] sm:$0xff] %vm945_vm1, %v807_v19 }
 0x125   :  { %1137 = vmatmul.msk.f32.gmra.mxu3 %vm40_vm0, %v536_v20  ;;  %v762_v22 = vpop.f32.mrf.mxu0 }
 0x126   :  { %949 = vst.msk [vmem:[%s1765_s3 + $0x18] sm:$0xff] %vm945_vm1, %v762_v22 }
 0x128   :  { %1122 = vmatmul.msk.f32.gmra.mxu2 %vm40_vm0, %v521_v23 }
 0x12a   :  { %v810_v24 = vpop.f32.mrf.mxu1 }
 0x12b   :  { %965 = vst.msk [vmem:[%s1765_s3 + $0x98] sm:$0xff] %vm945_vm1, %v810_v24 }
 0x12d   :  { %1138 = vmatmul.msk.f32.gmra.mxu3 %vm40_vm0, %v537_v25  ;;  %v765_v26 = vpop.f32.mrf.mxu0 }
 0x12e   :  { %950 = vst.msk [vmem:[%s1765_s3 + $0x20] sm:$0xff] %vm945_vm1, %v765_v26 }
 0x130   :  { %1123 = vmatmul.msk.f32.gmra.mxu2 %vm40_vm0, %v522_v27 }
 0x132   :  { %v813_v28 = vpop.f32.mrf.mxu1 }
 0x133   :  { %966 = vst.msk [vmem:[%s1765_s3 + $0xa0] sm:$0xff] %vm945_vm1, %v813_v28 }
 0x135   :  { %1139 = vmatmul.msk.f32.gmra.mxu3 %vm40_vm0, %v538_v29  ;;  %v768_v30 = vpop.f32.mrf.mxu0 }
 0x136   :  { %951 = vst.msk [vmem:[%s1765_s3 + $0x28] sm:$0xff] %vm945_vm1, %v768_v30 }
 0x138   :  { %1124 = vmatmul.msk.f32.gmra.mxu2 %vm40_vm0, %v523_v31 }
 0x13a   :  { %v816_v32 = vpop.f32.mrf.mxu1 }
 0x13b   :  { %967 = vst.msk [vmem:[%s1765_s3 + $0xa8] sm:$0xff] %vm945_vm1, %v816_v32 }
 0x13d   :  { %1140 = vmatmul.msk.f32.gmra.mxu3 %vm40_vm0, %v539_v33  ;;  %v771_v34 = vpop.f32.mrf.mxu0 }
 0x13e   :  { %952 = vst.msk [vmem:[%s1765_s3 + $0x30] sm:$0xff] %vm945_vm1, %v771_v34 }
 0x140   :  { %1125 = vmatmul.msk.f32.gmra.mxu2 %vm40_vm0, %v524_v35 }
 0x142   :  { %v819_v36 = vpop.f32.mrf.mxu1 }
 0x143   :  { %968 = vst.msk [vmem:[%s1765_s3 + $0xb0] sm:$0xff] %vm945_vm1, %v819_v36 }
 0x145   :  { %1141 = vmatmul.msk.f32.gmra.mxu3 %vm40_vm0, %v540_v37  ;;  %v774_v38 = vpop.f32.mrf.mxu0 }
 0x146   :  { %953 = vst.msk [vmem:[%s1765_s3 + $0x38] sm:$0xff] %vm945_vm1, %v774_v38 }
 0x148   :  { %1126 = vmatmul.msk.f32.gmra.mxu2 %vm40_vm0, %v525_v39 }
 0x14a   :  { %v822_v40 = vpop.f32.mrf.mxu1 }
 0x14b   :  { %969 = vst.msk [vmem:[%s1765_s3 + $0xb8] sm:$0xff] %vm945_vm1, %v822_v40 }
 0x14d   :  { %1142 = vmatmul.msk.f32.gmra.mxu3 %vm40_vm0, %v541_v41  ;;  %v777_v42 = vpop.f32.mrf.mxu0 }
 0x14e   :  { %954 = vst.msk [vmem:[%s1765_s3 + $0x40] sm:$0xff] %vm945_vm1, %v777_v42 }
 0x152   :  { %v825_v43 = vpop.f32.mrf.mxu1 }
 0x153   :  { %970 = vst.msk [vmem:[%s1765_s3 + $0xc0] sm:$0xff] %vm945_vm1, %v825_v43  ;;  %v849_v44 = vpop.f32.mrf.mxu2 }
 0x154   :  { %978 = vst.msk [vmem:[%s1765_s3 + $0x100] sm:$0xff] %vm945_vm1, %v849_v44 }
 0x155   :  { %v780_v45 = vpop.f32.mrf.mxu0 }
 0x156   :  { %955 = vst.msk [vmem:[%s1765_s3 + $0x48] sm:$0xff] %vm945_vm1, %v780_v45 }
 0x158   :  { %v897_v46 = vpop.f32.mrf.mxu3 }
 0x159   :  { %994 = vst.msk [vmem:[%s1765_s3 + $0x180] sm:$0xff] %vm945_vm1, %v897_v46 }
 0x15a   :  { %v828_v47 = vpop.f32.mrf.mxu1 }
 0x15b   :  { %971 = vst.msk [vmem:[%s1765_s3 + $0xc8] sm:$0xff] %vm945_vm1, %v828_v47  ;;  %v852_v48 = vpop.f32.mrf.mxu2 }
 0x15c   :  { %979 = vst.msk [vmem:[%s1765_s3 + $0x108] sm:$0xff] %vm945_vm1, %v852_v48 }
 0x15d   :  { %v783_v49 = vpop.f32.mrf.mxu0 }
 0x15e   :  { %956 = vst.msk [vmem:[%s1765_s3 + $0x50] sm:$0xff] %vm945_vm1, %v783_v49 }
 0x160   :  { %v900_v50 = vpop.f32.mrf.mxu3 }
 0x161   :  { %995 = vst.msk [vmem:[%s1765_s3 + $0x188] sm:$0xff] %vm945_vm1, %v900_v50 }
 0x162   :  { %v831_v51 = vpop.f32.mrf.mxu1 }
 0x163   :  { %972 = vst.msk [vmem:[%s1765_s3 + $0xd0] sm:$0xff] %vm945_vm1, %v831_v51  ;;  %v855_v52 = vpop.f32.mrf.mxu2 }
 0x164   :  { %980 = vst.msk [vmem:[%s1765_s3 + $0x110] sm:$0xff] %vm945_vm1, %v855_v52 }
 0x165   :  { %v786_v53 = vpop.f32.mrf.mxu0 }
 0x166   :  { %957 = vst.msk [vmem:[%s1765_s3 + $0x58] sm:$0xff] %vm945_vm1, %v786_v53 }
 0x168   :  { %v903_v54 = vpop.f32.mrf.mxu3 }
 0x169   :  { %996 = vst.msk [vmem:[%s1765_s3 + $0x190] sm:$0xff] %vm945_vm1, %v903_v54 }
 0x16a   :  { %v834_v55 = vpop.f32.mrf.mxu1 }
 0x16b   :  { %973 = vst.msk [vmem:[%s1765_s3 + $0xd8] sm:$0xff] %vm945_vm1, %v834_v55  ;;  %v858_v56 = vpop.f32.mrf.mxu2 }
 0x16c   :  { %981 = vst.msk [vmem:[%s1765_s3 + $0x118] sm:$0xff] %vm945_vm1, %v858_v56 }
 0x16d   :  { %v789_v57 = vpop.f32.mrf.mxu0 }
 0x16e   :  { %958 = vst.msk [vmem:[%s1765_s3 + $0x60] sm:$0xff] %vm945_vm1, %v789_v57 }
 0x170   :  { %v906_v58 = vpop.f32.mrf.mxu3 }
 0x171   :  { %997 = vst.msk [vmem:[%s1765_s3 + $0x198] sm:$0xff] %vm945_vm1, %v906_v58 }
 0x172   :  { %v837_v59 = vpop.f32.mrf.mxu1 }
 0x173   :  { %974 = vst.msk [vmem:[%s1765_s3 + $0xe0] sm:$0xff] %vm945_vm1, %v837_v59  ;;  %v861_v60 = vpop.f32.mrf.mxu2 }
 0x174   :  { %982 = vst.msk [vmem:[%s1765_s3 + $0x120] sm:$0xff] %vm945_vm1, %v861_v60 }
 0x175   :  { %v792_v61 = vpop.f32.mrf.mxu0 }
 0x176   :  { %959 = vst.msk [vmem:[%s1765_s3 + $0x68] sm:$0xff] %vm945_vm1, %v792_v61 }
 0x178   :  { %v909_v62 = vpop.f32.mrf.mxu3 }
 0x179   :  { %998 = vst.msk [vmem:[%s1765_s3 + $0x1a0] sm:$0xff] %vm945_vm1, %v909_v62 }
 0x17a   :  { %v840_v63 = vpop.f32.mrf.mxu1 }
 0x17b   :  { %975 = vst.msk [vmem:[%s1765_s3 + $0xe8] sm:$0xff] %vm945_vm1, %v840_v63  ;;  %v864_v0 = vpop.f32.mrf.mxu2 }
 0x17c   :  { %983 = vst.msk [vmem:[%s1765_s3 + $0x128] sm:$0xff] %vm945_vm1, %v864_v0 }
 0x17d   :  { %v795_v1 = vpop.f32.mrf.mxu0 }
 0x17e   :  { %960 = vst.msk [vmem:[%s1765_s3 + $0x70] sm:$0xff] %vm945_vm1, %v795_v1 }
 0x180   :  { %v912_v2 = vpop.f32.mrf.mxu3 }
 0x181   :  { %999 = vst.msk [vmem:[%s1765_s3 + $0x1a8] sm:$0xff] %vm945_vm1, %v912_v2 }
 0x182   :  { %v843_v3 = vpop.f32.mrf.mxu1 }
 0x183   :  { %976 = vst.msk [vmem:[%s1765_s3 + $0xf0] sm:$0xff] %vm945_vm1, %v843_v3  ;;  %v867_v4 = vpop.f32.mrf.mxu2 }
 0x184   :  { %984 = vst.msk [vmem:[%s1765_s3 + $0x130] sm:$0xff] %vm945_vm1, %v867_v4 }
 0x185   :  { %v798_v5 = vpop.f32.mrf.mxu0 }
 0x186   :  { %961 = vst.msk [vmem:[%s1765_s3 + $0x78] sm:$0xff] %vm945_vm1, %v798_v5 }
 0x188   :  { %v915_v6 = vpop.f32.mrf.mxu3 }
 0x189   :  { %1000 = vst.msk [vmem:[%s1765_s3 + $0x1b0] sm:$0xff] %vm945_vm1, %v915_v6 }
 0x18a   :  { %v846_v7 = vpop.f32.mrf.mxu1 }
 0x18b   :  { %977 = vst.msk [vmem:[%s1765_s3 + $0xf8] sm:$0xff] %vm945_vm1, %v846_v7  ;;  %v870_v8 = vpop.f32.mrf.mxu2 }
 0x18c   :  { %985 = vst.msk [vmem:[%s1765_s3 + $0x138] sm:$0xff] %vm945_vm1, %v870_v8 }
 0x190   :  { %v918_v9 = vpop.f32.mrf.mxu3 }
 0x191   :  { %1001 = vst.msk [vmem:[%s1765_s3 + $0x1b8] sm:$0xff] %vm945_vm1, %v918_v9 }
 0x193   :  { %v873_v10 = vpop.f32.mrf.mxu2 }
 0x194   :  { %986 = vst.msk [vmem:[%s1765_s3 + $0x140] sm:$0xff] %vm945_vm1, %v873_v10 }
 0x198   :  { %v921_v11 = vpop.f32.mrf.mxu3 }
 0x199   :  { %1002 = vst.msk [vmem:[%s1765_s3 + $0x1c0] sm:$0xff] %vm945_vm1, %v921_v11 }
 0x19b   :  { %v876_v12 = vpop.f32.mrf.mxu2 }
 0x19c   :  { %987 = vst.msk [vmem:[%s1765_s3 + $0x148] sm:$0xff] %vm945_vm1, %v876_v12 }
 0x1a0   :  { %v924_v13 = vpop.f32.mrf.mxu3 }
 0x1a1   :  { %1003 = vst.msk [vmem:[%s1765_s3 + $0x1c8] sm:$0xff] %vm945_vm1, %v924_v13 }
 0x1a3   :  { %v879_v14 = vpop.f32.mrf.mxu2 }
 0x1a4   :  { %988 = vst.msk [vmem:[%s1765_s3 + $0x150] sm:$0xff] %vm945_vm1, %v879_v14 }
 0x1a8   :  { %v927_v15 = vpop.f32.mrf.mxu3 }
 0x1a9   :  { %1004 = vst.msk [vmem:[%s1765_s3 + $0x1d0] sm:$0xff] %vm945_vm1, %v927_v15 }
 0x1ab   :  { %v882_v16 = vpop.f32.mrf.mxu2 }
 0x1ac   :  { %989 = vst.msk [vmem:[%s1765_s3 + $0x158] sm:$0xff] %vm945_vm1, %v882_v16 }
 0x1b0   :  { %v930_v17 = vpop.f32.mrf.mxu3 }
 0x1b1   :  { %1005 = vst.msk [vmem:[%s1765_s3 + $0x1d8] sm:$0xff] %vm945_vm1, %v930_v17 }
 0x1b3   :  { %v885_v18 = vpop.f32.mrf.mxu2 }
 0x1b4   :  { %990 = vst.msk [vmem:[%s1765_s3 + $0x160] sm:$0xff] %vm945_vm1, %v885_v18 }
 0x1b8   :  { %v933_v19 = vpop.f32.mrf.mxu3 }
 0x1b9   :  { %1006 = vst.msk [vmem:[%s1765_s3 + $0x1e0] sm:$0xff] %vm945_vm1, %v933_v19 }
 0x1bb   :  { %v888_v20 = vpop.f32.mrf.mxu2 }
 0x1bc   :  { %991 = vst.msk [vmem:[%s1765_s3 + $0x168] sm:$0xff] %vm945_vm1, %v888_v20 }
 0x1c0   :  { %v936_v21 = vpop.f32.mrf.mxu3 }
 0x1c1   :  { %1007 = vst.msk [vmem:[%s1765_s3 + $0x1e8] sm:$0xff] %vm945_vm1, %v936_v21 }
 0x1c3   :  { %v891_v22 = vpop.f32.mrf.mxu2 }
 0x1c4   :  { %992 = vst.msk [vmem:[%s1765_s3 + $0x170] sm:$0xff] %vm945_vm1, %v891_v22 }
 0x1c8   :  { %v939_v23 = vpop.f32.mrf.mxu3 }
 0x1c9   :  { %1008 = vst.msk [vmem:[%s1765_s3 + $0x1f0] sm:$0xff] %vm945_vm1, %v939_v23 }
 0x1cb   :  { %v894_v24 = vpop.f32.mrf.mxu2 }
 0x1cc   :  { %993 = vst.msk [vmem:[%s1765_s3 + $0x178] sm:$0xff] %vm945_vm1, %v894_v24 }
 0x1d0   :  { %v942_v25 = vpop.f32.mrf.mxu3 }
 0x1d1   :  { %1009 = vst.msk [vmem:[%s1765_s3 + $0x1f8] sm:$0xff] %vm945_vm1, %v942_v25 }
 0x1d2   :  { %1014 = vsyncpa [#allocation4], 1 }

</bundles_post_ra>
